<compile_context>
chip_gen: v7x
topology: tpu7x:2x2x1
jax: 0.10.0
libtpu: 0.0.40
codegen_flags: <defaults>
</compile_context>

<pallas_src>
import functools

import jax
import jax.numpy as jnp
from jax import lax
from jax.experimental import pallas as pl
from jax.experimental.pallas import tpu as pltpu

# Finite "minus infinity". Do NOT shrink: correctness of the single-where mask
# path relies on exp(MASK_VALUE - m_new) flushing to exactly 0 in f32.
MASK_VALUE = -1e30
# 48 MiB fits v7x's 64 MiB physical VMEM with headroom; raise toward 96 MiB on
# v5e/v6e (128 MiB physical) if tiles are enlarged. Current tiles use << 16 MiB.
VMEM_LIMIT = 48 * 1024 * 1024


def _choose_tile(dim, target, align):
    """Largest multiple of `align` that divides `dim` and is <= target, else full dim."""
    if dim <= target:
        return dim
    t = (min(target, dim) // align) * align
    while t >= align:
        if dim % t == 0:
            return t
        t -= align
    return dim


# ----------------------------------------------------------------------------
# Kernel 1: tiled matmul with fused bias. Two variants: a direct one for a
# single K step (no scratch / init / finalize) and a K-accumulating one.
# Operands are expected to already be in the MXU dtype (bf16).
# ----------------------------------------------------------------------------
def _matmul_kernel_direct(x_ref, w_ref, *rest, has_bias):
    if has_bias:
        b_ref, o_ref = rest
    else:
        (o_ref,) = rest
    out = jnp.dot(x_ref[...], w_ref[...], preferred_element_type=jnp.float32)
    if has_bias:
        out = out + b_ref[...].astype(jnp.float32)
    o_ref[...] = out.astype(o_ref.dtype)


def _matmul_kernel_acc(x_ref, w_ref, *rest, has_bias):
    if has_bias:
        b_ref, o_ref, acc_ref = rest
    else:
        o_ref, acc_ref = rest

    @pl.when(pl.program_id(2) == 0)
    def _():
        acc_ref[...] = jnp.zeros_like(acc_ref)

    acc_ref[...] += jnp.dot(x_ref[...], w_ref[...],
                            preferred_element_type=jnp.float32)

    @pl.when(pl.program_id(2) == pl.num_programs(2) - 1)
    def _():
        out = acc_ref[...]
        if has_bias:
            out = out + b_ref[...].astype(jnp.float32)
        o_ref[...] = out.astype(o_ref.dtype)


def pallas_matmul(x, w, bias=None, *, tm_target=512, tn_target=512,
                  tk_target=1024, out_dtype=None):
    M, K = x.shape
    K2, N = w.shape
    assert K == K2
    out_dtype = out_dtype or x.dtype

    tm = _choose_tile(M, tm_target, 8)
    tn = _choose_tile(N, tn_target, 128)
    tk = _choose_tile(K, tk_target, 128)
    has_bias = bias is not None
    args = [x, w] + ([bias.reshape(1, N)] if has_bias else [])

    if tk == K:
        # Single K step: no accumulator scratch, no init/finalize round-trip.
        grid = (M // tm, N // tn)
        in_specs = [pl.BlockSpec((tm, K), lambda i, j: (i, 0)),
                    pl.BlockSpec((K, tn), lambda i, j: (0, j))]
        if has_bias:
            in_specs.append(pl.BlockSpec((1, tn), lambda i, j: (0, j)))
        return pl.pallas_call(
            functools.partial(_matmul_kernel_direct, has_bias=has_bias),
            out_shape=jax.ShapeDtypeStruct((M, N), out_dtype),
            grid=grid,
            in_specs=in_specs,
            out_specs=pl.BlockSpec((tm, tn), lambda i, j: (i, j)),
            compiler_params=pltpu.CompilerParams(
                dimension_semantics=("parallel", "parallel"),
                vmem_limit_bytes=VMEM_LIMIT),
        )(*args)

    grid = (M // tm, N // tn, K // tk)
    in_specs = [pl.BlockSpec((tm, tk), lambda i, j, k: (i, k)),
                pl.BlockSpec((tk, tn), lambda i, j, k: (k, j))]
    if has_bias:
        in_specs.append(pl.BlockSpec((1, tn), lambda i, j, k: (0, j)))
    return pl.pallas_call(
        functools.partial(_matmul_kernel_acc, has_bias=has_bias),
        out_shape=jax.ShapeDtypeStruct((M, N), out_dtype),
        grid=grid,
        in_specs=in_specs,
        out_specs=pl.BlockSpec((tm, tn), lambda i, j, k: (i, j)),
        scratch_shapes=[pltpu.VMEM((tm, tn), jnp.float32)],
        compiler_params=pltpu.CompilerParams(
            dimension_semantics=("parallel", "parallel", "arbitrary"),
            vmem_limit_bytes=VMEM_LIMIT),
    )(*args)


# ----------------------------------------------------------------------------
# Kernel 2: flash-style attention core reading q/k/v straight out of the packed
# (B, L, 3*H*hd) qkv activation. Each grid step handles `hp` heads (hp*hd lanes,
# lane-dense) for one q-tile and one kv-tile.
# ----------------------------------------------------------------------------
def _attn_kernel(q_ref, k_ref, v_ref, *rest, hd, has_mask):
    if has_mask:
        mask_ref, o_ref, m_ref, l_ref, acc_ref = rest
    else:
        o_ref, m_ref, l_ref, acc_ref = rest

    _, tq, blk = q_ref.shape
    hp = blk // hd
    ki = pl.program_id(3)

    @pl.when(ki == 0)
    def _():
        m_ref[...] = jnp.full_like(m_ref, MASK_VALUE)
        l_ref[...] = jnp.zeros_like(l_ref)
        acc_ref[...] = jnp.zeros_like(acc_ref)

    q_all = q_ref[0]     # (tq, blk) bf16; Q already pre-scaled by hd**-0.5
    k_all = k_ref[0]     # (tkv, blk)
    v_all = v_ref[0]     # (tkv, blk)
    if has_mask:
        keep = mask_ref[0] != 0          # (tq, tkv) bool, shared across heads

    alpha_cols, pv_cols = [], []
    for j in range(hp):                  # static unroll over heads in this block
        sl = slice(j * hd, (j + 1) * hd)
        # q . k^T contracting hd of both operands (no transpose), f32 MXU acc.
        s = lax.dot_general(q_all[:, sl], k_all[:, sl],
                            (((1,), (1,)), ((), ())),
                            preferred_element_type=jnp.float32)   # (tq, tkv)
        if has_mask:
            # Single select; exp(MASK_VALUE - m_new) flushes to exactly 0, so no
            # extra p*mask pass is needed. (Rows masked on every key produce the
            # mean of V instead of the reference's NaN -- documented divergence.)
            s = jnp.where(keep, s, MASK_VALUE)

        m_prev = m_ref[j]                                             # (tq, 1)
        m_new = jnp.maximum(m_prev, jnp.max(s, axis=-1, keepdims=True))
        alpha = jnp.exp(m_prev - m_new)
        p = jnp.exp(s - m_new)                                        # f32
        l_ref[j] = alpha * l_ref[j] + jnp.sum(p, axis=-1, keepdims=True)
        m_ref[j] = m_new

        pv_cols.append(lax.dot_general(p.astype(v_all.dtype), v_all[:, sl],
                                       (((1,), (0,)), ((), ())),
                                       preferred_element_type=jnp.float32))
        alpha_cols.append(jnp.broadcast_to(alpha, (tq, hd)))

    # One lane-dense (tq, blk) accumulator update instead of per-head 64-lane writes.
    acc_ref[...] = (jnp.concatenate(alpha_cols, axis=-1) * acc_ref[...]
                    + jnp.concatenate(pv_cols, axis=-1))

    @pl.when(ki == pl.num_programs(3) - 1)
    def _():
        inv_cols = [jnp.broadcast_to(pl.reciprocal(l_ref[j], approx=True), (tq, hd))
                    for j in range(hp)]
        # Single full-width, lane-dense store of the normalized output block.
        o_ref[0] = (acc_ref[...] * jnp.concatenate(inv_cols, axis=-1)
                    ).astype(o_ref.dtype)


def pallas_attention(qkv, num_heads, head_dim, mask=None, *,
                     tq_target=256, tkv_target=256, out_dtype=None):
    B, L, packed = qkv.shape
    H, hd = num_heads, head_dim
    assert packed == 3 * H * hd
    out_dtype = out_dtype or qkv.dtype

    # Heads per block: LARGEST divisor of H giving a lane-dense (multiple-of-128)
    # block, capped at 512 lanes.
    hp = None
    for cand in range(H, 0, -1):
        if H % cand == 0 and (cand * hd) % 128 == 0 and cand * hd <= 512:
            hp = cand
            break
    if hp is None:
        for cand in range(H, 0, -1):
            if H % cand == 0 and (cand * hd) % 128 == 0:
                hp = cand
                break
    if hp is None:
        hp = H  # TODO(synk): lane-dense fallback when no H divisor reaches 128 lanes
    nhb = H // hp
    blk = hp * hd

    tq = _choose_tile(L, tq_target, 8)
    tkv = _choose_tile(L, tkv_target, 128)
    grid = (B, nhb, L // tq, L // tkv)   # kv (reduction) axis last
    # TODO(synk): skip fully-masked kv tiles (e.g. causal) via scalar-prefetched
    # per-q-tile kv counts; left out to keep the general-mask path simple.

    q_spec = pl.BlockSpec((1, tq, blk), lambda b, p, qi, ki: (b, qi, p))
    k_spec = pl.BlockSpec((1, tkv, blk), lambda b, p, qi, ki: (b, ki, nhb + p))
    v_spec = pl.BlockSpec((1, tkv, blk), lambda b, p, qi, ki: (b, ki, 2 * nhb + p))
    out_spec = pl.BlockSpec((1, tq, blk), lambda b, p, qi, ki: (b, qi, p))

    in_specs = [q_spec, k_spec, v_spec]
    args = [qkv, qkv, qkv]
    has_mask = mask is not None
    if has_mask:
        in_specs.append(pl.BlockSpec((1, tq, tkv), lambda b, p, qi, ki: (b, qi, ki)))
        args.append(mask.astype(jnp.int8))   # int8 mask: 4x less HBM traffic vs f32

    kernel = functools.partial(_attn_kernel, hd=hd, has_mask=has_mask)
    return pl.pallas_call(
        kernel,
        out_shape=jax.ShapeDtypeStruct((B, L, H * hd), out_dtype),
        grid=grid,
        in_specs=in_specs,
        out_specs=out_spec,
        scratch_shapes=[
            pltpu.VMEM((hp, tq, 1), jnp.float32),   # running max m
            pltpu.VMEM((hp, tq, 1), jnp.float32),   # running denom l
            pltpu.VMEM((tq, blk), jnp.float32),     # running output acc (lane-dense)
        ],
        compiler_params=pltpu.CompilerParams(
            dimension_semantics=("parallel", "parallel", "parallel", "arbitrary"),
            vmem_limit_bytes=VMEM_LIMIT),
    )(*args)


# ----------------------------------------------------------------------------
# Module wrapper (mirrors nanofm Attention.forward)
# ----------------------------------------------------------------------------
class AttentionPallas:
    def __init__(self, dim, head_dim=64, qkv_bias=False, proj_bias=False,
                 key=None, compute_dtype=jnp.bfloat16):
        assert dim % head_dim == 0
        self.dim = dim
        self.head_dim = head_dim
        self.num_heads = dim // head_dim
        self.scale = head_dim ** (-0.5)
        self.compute_dtype = compute_dtype
        if key is None:
            key = jax.random.PRNGKey(0)
        k1, k2 = jax.random.split(key)
        bound = 1.0 / (dim ** 0.5)
        qn = 3 * self.num_heads * head_dim
        dq = self.num_heads * head_dim

        # Master weights (f32, stored pre-transposed (in, out)); used by the reference.
        self.w_qkv_ref = jax.random.uniform(k1, (dim, qn), jnp.float32,
                                            minval=-bound, maxval=bound)
        self.w_out_ref = jax.random.uniform(k2, (dim, dim), jnp.float32,
                                            minval=-bound, maxval=bound)
        self.b_qkv_ref = jnp.zeros((qn,), jnp.float32) if qkv_bias else None
        self.b_out = jnp.zeros((dim,), jnp.float32) if proj_bias else None

        # Kernel weights: softmax scale folded into the Q columns (exact for the
        # power-of-two scale), pre-cast to bf16 once. No per-call .T, no in-kernel scale.
        scale_vec = jnp.concatenate([jnp.full((dq,), self.scale, jnp.float32),
                                     jnp.ones((2 * dq,), jnp.float32)])
        self.w_qkv_t = (self.w_qkv_ref * scale_vec[None, :]).astype(compute_dtype)
        self.w_out_t = self.w_out_ref.astype(compute_dtype)
        self.b_qkv = (self.b_qkv_ref * scale_vec) if qkv_bias else None

    def __call__(self, x, mask=None):
        B, L, D = x.shape
        H, hd = self.num_heads, self.head_dim
        c = self.compute_dtype

        # QKV projection: activations cast to bf16 once; output stays bf16 in the
        # packed (B, L, 3*H*hd) layout (pure reshape, no HBM relayout).
        qkv = pallas_matmul(x.reshape(B * L, D).astype(c), self.w_qkv_t,
                            self.b_qkv, out_dtype=c)
        qkv = qkv.reshape(B, L, 3 * H * hd)

        # Flash-style attention core; heads sliced via BlockSpec index_maps.
        o = pallas_attention(qkv, H, hd, mask=mask, out_dtype=c)

        # Output projection (o is already (B, L, H*hd) = (B, L, D), bf16).
        out = pallas_matmul(o.reshape(B * L, D), self.w_out_t, self.b_out,
                            out_dtype=x.dtype)
        return out.reshape(B, L, D)


# ----------------------------------------------------------------------------
# Pure-JAX reference (same bf16-operand / bf16-intermediate / f32-accumulate
# policy as the kernels; uses the unscaled master weights + explicit scale).
# ----------------------------------------------------------------------------
def reference_attention(mod, x, mask=None):
    B, L, D = x.shape
    H, hd = mod.num_heads, mod.head_dim
    c = mod.compute_dtype

    qkv = jnp.dot(x.reshape(B * L, D).astype(c), mod.w_qkv_ref.astype(c),
                  preferred_element_type=jnp.float32)
    if mod.b_qkv_ref is not None:
        qkv = qkv + mod.b_qkv_ref
    qkv = qkv.astype(c).reshape(B, L, 3, H, hd).transpose(2, 0, 3, 1, 4)
    q, k, v = qkv[0], qkv[1], qkv[2]

    s = jnp.einsum("bhld,bhmd->bhlm", q, k,
                   preferred_element_type=jnp.float32) * mod.scale
    if mask is not None:
        s = jnp.where(mask[:, None, :, :], s, -jnp.inf)
    p = jax.nn.softmax(s, axis=-1)
    o = jnp.einsum("bhlm,bhmd->bhld", p.astype(c), v,
                   preferred_element_type=jnp.float32)
    o = o.astype(c).transpose(0, 2, 1, 3).reshape(B * L, D)

    out = jnp.dot(o, mod.w_out_ref.astype(c), preferred_element_type=jnp.float32)
    if mod.b_out is not None:
        out = out + mod.b_out
    return out.astype(x.dtype).reshape(B, L, D)


if __name__ == "__main__":
    # Small shapes consistent with the module: dim=128, head_dim=64 -> 2 heads.
    B, L, D, HEAD_DIM = 2, 8, 128, 64
    key = jax.random.PRNGKey(0)
    kx, kw = jax.random.split(key)
    x = jax.random.normal(kx, (B, L, D), jnp.float32)

    attn = AttentionPallas(dim=D, head_dim=HEAD_DIM, key=kw)

    # bf16 intermediates + approx reciprocal => compare at bf16-appropriate tolerance.
    TOL = 2e-2

    out = jax.block_until_ready(attn(x))          # mask=None path
    ref = reference_attention(attn, x)
    assert out.shape == (B, L, D)
    assert jnp.allclose(out, ref, atol=TOL, rtol=TOL), "mismatch vs reference"

    # Masked path (lower-triangular causal mask).
    mask = jnp.tril(jnp.ones((L, L), jnp.bool_))[None].repeat(B, axis=0)
    out_m = jax.block_until_ready(attn(x, mask=mask))
    ref_m = reference_attention(attn, x, mask=mask)
    assert jnp.allclose(out_m, ref_m, atol=TOL, rtol=TOL), "masked mismatch"

    print("KERNEL_OK")
</pallas_src>

<mosaic_0001>
module attributes {stable_mosaic.version = 11 : i64} {
  func.func @_matmul_kernel_direct(%arg0: i32, %arg1: i32, %arg2: memref<16x128xbf16, #tpu.memory_space<vmem>>, %arg3: memref<128x384xbf16, #tpu.memory_space<vmem>>, %arg4: memref<16x384xbf16, #tpu.memory_space<vmem>>) attributes {dimension_semantics = [#tpu.dimension_semantics<parallel>, #tpu.dimension_semantics<parallel>], iteration_bounds = array<i64: 1, 1>, scalar_prefetch = 0 : i64, scratch_operands = 0 : i64, tpu.core_type = #tpu.core_type<tc>, window_params = [{transform_indices = @transform_0, window_bounds = array<i64: 16, 128>}, {transform_indices = @transform_1, window_bounds = array<i64: 128, 384>}, {transform_indices = @transform_2, window_bounds = array<i64: 16, 384>}]} {
    %c0 = arith.constant 0 : index
    %c0_0 = arith.constant 0 : index
    %0 = vector.load %arg2[%c0, %c0_0] : memref<16x128xbf16, #tpu.memory_space<vmem>>, vector<16x128xbf16>
    %c0_1 = arith.constant 0 : index
    %c0_2 = arith.constant 0 : index
    %1 = vector.load %arg3[%c0_1, %c0_2] : memref<128x384xbf16, #tpu.memory_space<vmem>>, vector<128x384xbf16>
    %cst = arith.constant dense<0.000000e+00> : vector<16x384xf32>
    %2 = tpu.matmul %0, %1, %cst {dimension_numbers = #tpu.dot_dimension_numbers<[1], [0], [0], [1], [0, 0, 1, 1], [], []>} : vector<16x128xbf16>, vector<128x384xbf16>, vector<16x384xf32> -> vector<16x384xf32>
    %3 = arith.truncf %2 : vector<16x384xf32> to vector<16x384xbf16>
    %c0_3 = arith.constant 0 : index
    %c0_4 = arith.constant 0 : index
    %4 = vector.load %arg4[%c0_3, %c0_4] : memref<16x384xbf16, #tpu.memory_space<vmem>>, vector<16x384xbf16>
    tpu.vector_store %arg4[%c0_3, %c0_4], %3 {strides = array<i32>} : memref<16x384xbf16, #tpu.memory_space<vmem>>, vector<16x384xbf16>,
    return
  }
  func.func @transform_0(%arg0: i32, %arg1: i32) -> (i32, i32) {
    %c0_i32 = arith.constant 0 : i32
    %c0_i32_0 = arith.constant 0 : i32
    return %arg0, %c0_i32 : i32, i32
  }
  func.func @transform_1(%arg0: i32, %arg1: i32) -> (i32, i32) {
    %c0_i32 = arith.constant 0 : i32
    %c0_i32_0 = arith.constant 0 : i32
    return %c0_i32, %arg1 : i32, i32
  }
  func.func @transform_2(%arg0: i32, %arg1: i32) -> (i32, i32) {
    %c0_i32 = arith.constant 0 : i32
    return %arg0, %arg1 : i32, i32
  }
}

</mosaic_0001>

<bundles_post_ra>
// kernel: tpu_custom_call.1
= control target key start
LH: loop header
LB: loop body
LE: loop exit
PB: predicated region body
PF: predicated region fallthrough
CT: control target
= control target key end

     0   :  { %7 = vsyncpa [#allocation3], 0  ;;  %s579_s0 = inlined_call_operand.hbm [shape: bf16[16,128], index: 0, kind: input, shape index: {}]   ;;  %s580_s1 = inlined_call_operand.hbm [shape: bf16[128,384], index: 1, kind: input, shape index: {}]   ;;  %s581_s2 = inlined_call_operand.hbm [shape: bf16[16,384], index: 2, kind: output, shape index: {}]  }
   0x1   :  { %8 = vsyncpa [#allocation6], 0 }
   0x2   :  { %9 = vsyncpa [#allocation4], 0  ;;  %s512_s9 = smov [#allocation2]   ;;  %s440_s13 = scalar_lea.hbm %s579_s0, 128 }
   0x3   :  { %s15_s10 = sshll.u32 %s512_s9, 4  ;;  %p441_p0 = scmp.ne.s32.totalorder %s579_s0, %s440_s13  ;;  %s16_s10 = int_to_ptr.vmem [resolvable:$true] %s15_s10 }
   0x4   :  { %p444_p1 = scmp.lt.u32.totalorder %s440_s13, %s579_s0 }
   0x6   :  { %p446_p2 = pnand %p444_p1, %p441_p0 }
   0x8   :  { %449 = shalt.err (!%p446_p2)
}
   0x9   :  { %s450_s18 = scalar_lea.vmem %s16_s10, 128  ;;  %p455_p4 = scmp.lt.s32.totalorder %s16_s10, %s16_s10 }
   0xa   :  { %p451_p3 = scmp.ne.s32.totalorder %s16_s10, %s450_s18  ;;  %p456_p5 = scmp.lt.s32.totalorder %s450_s18, %s450_s18 }
   0xc   :  { %p457_p6 = por %p456_p5, %p455_p4 }
   0xe   :  { %p458_p7 = pnand %p457_p6, %p451_p3 }
  0x10   :  { %461 = shalt.err (!%p458_p7)
}
  0x11   :  { %s513_s19 = smov 64   ;;  %s514_s20 = smov 4  }
  0x12   :  { %21 = dma.hbm_to_vmem [thread:$0]  %s579_s0, 128, %s16_s10, [#allocation3], %s513_s19, %s513_s19, %s514_s20  }
  0x13   :  { %s515_s23 = smov [#allocation5]   ;;  %s462_s27 = scalar_lea.hbm %s580_s1, 3072 }
  0x14   :  { %s27_s24 = sshll.u32 %s515_s23, 4  ;;  %p463_p8 = scmp.ne.s32.totalorder %s580_s1, %s462_s27  ;;  %s28_s24 = int_to_ptr.vmem [resolvable:$true] %s27_s24 }
  0x15   :  { %p466_p9 = scmp.lt.u32.totalorder %s462_s27, %s580_s1 }
  0x17   :  { %p468_p10 = pnand %p466_p9, %p463_p8 }
  0x19   :  { %471 = shalt.err (!%p468_p10)
}
  0x1a   :  { %s472_s4 = scalar_lea.vmem %s28_s24, 3072  ;;  %p477_p12 = scmp.lt.s32.totalorder %s28_s24, %s28_s24 }
  0x1b   :  { %p473_p11 = scmp.ne.s32.totalorder %s28_s24, %s472_s4  ;;  %p478_p13 = scmp.lt.s32.totalorder %s472_s4, %s472_s4 }
  0x1d   :  { %p479_p0 = por %p478_p13, %p477_p12 }
  0x1f   :  { %p480_p1 = pnand %p479_p0, %p473_p11 }
  0x21   :  { %483 = shalt.err (!%p480_p1)
}
  0x22   :  { %s516_s0 = smov 192   ;;  %s517_s5 = smov 12  }
  0x23   :  { %33 = dma.hbm_to_vmem [thread:$0]  %s580_s1, 3072, %s28_s24, [#allocation6], %s516_s0, %s516_s0, %s517_s5  }
  0x24   :  { %506 = dma.done.wait [#allocation3], 128  }
  0x25   :  { %507 = vsyncadd [#allocation3], 4294967168 }
  0x26   :  { %508 = dma.done.wait [#allocation6], 3072  }
  0x27   :  { %509 = vsyncadd [#allocation6], 4294964224  ;;  %v518_v0 = vmov 0.0   ;;  %vm519_vm0 = vmmov 0   ;;  %v520_v1 = vmov 0   ;;  %v439_v26 = vld [vmem:[#allocation2] sm:$0xff]  }
  0x28   :  { %377 = vmatprep.subr.bf16.mxu1 %v518_v0  ;;  %393 = vmatprep.mubr.msk.bf16.mxu1 %vm519_vm0, %v518_v0  ;;  %v407_v2 = vld [vmem:[#allocation5 + $0x4] ss:$12 sps:$4 sm:$0xff]   ;;  %v409_v3 = vld [vmem:[#allocation5 + $0x8] ss:$12 sps:$4 sm:$0xff]   ;;  %v410_v4 = vld [vmem:[#allocation5] ss:$12 sps:$4 sm:$0xff]  }
  0x29   :  { %241 = vmatprep.mubr.bf16.mxu0 %v520_v1  ;;  %209 = vmatprep.subr.bf16.mxu0 %v407_v2  ;;  %v411_v5 = vld [vmem:[#allocation5 + $0x1c] ss:$12 sps:$4 sm:$0xff]   ;;  %v413_v6 = vld [vmem:[#allocation5 + $0x20] ss:$12 sps:$4 sm:$0xff]   ;;  %v414_v7 = vld [vmem:[#allocation5 + $0x18] ss:$12 sps:$4 sm:$0xff]  }
  0x2a   :  { %378 = vmatpush3.bf16.msra.mxu1 %v409_v3  ;;  %210 = vmatpush1.bf16.msra.mxu0 %v410_v4  ;;  %v415_v8 = vld [vmem:[#allocation5 + $0x34] ss:$12 sps:$4 sm:$0xff]   ;;  %v417_v9 = vld [vmem:[#allocation5 + $0x38] ss:$12 sps:$4 sm:$0xff]   ;;  %v418_v10 = vld [vmem:[#allocation5 + $0x30] ss:$12 sps:$4 sm:$0xff]  }
  0x2b   :  { %379 = vmatprep.subr.bf16.mxu1 %v518_v0  ;;  %211 = vmatprep.subr.bf16.mxu0 %v411_v5  ;;  %v419_v11 = vld [vmem:[#allocation5 + $0x4c] ss:$12 sps:$4 sm:$0xff]   ;;  %v421_v12 = vld [vmem:[#allocation5 + $0x50] ss:$12 sps:$4 sm:$0xff]   ;;  %v422_v13 = vld [vmem:[#allocation5 + $0x48] ss:$12 sps:$4 sm:$0xff]  }
  0x2c   :  { %v423_v14 = vld [vmem:[#allocation5 + $0x64] ss:$12 sps:$4 sm:$0xff]   ;;  %v425_v15 = vld [vmem:[#allocation5 + $0x68] ss:$12 sps:$4 sm:$0xff]   ;;  %v426_v16 = vld [vmem:[#allocation5 + $0x60] ss:$12 sps:$4 sm:$0xff]  }
  0x2d   :  { %v427_v17 = vld [vmem:[#allocation5 + $0x7c] ss:$12 sps:$4 sm:$0xff]   ;;  %v429_v18 = vld [vmem:[#allocation5 + $0x80] ss:$12 sps:$4 sm:$0xff]   ;;  %v430_v19 = vld [vmem:[#allocation5 + $0x78] ss:$12 sps:$4 sm:$0xff]  }
  0x2e   :  { %380 = vmatpush3.bf16.msra.mxu1 %v413_v6  ;;  %212 = vmatpush1.bf16.msra.mxu0 %v414_v7  ;;  %v431_v20 = vld [vmem:[#allocation5 + $0x94] ss:$12 sps:$4 sm:$0xff]   ;;  %v433_v21 = vld [vmem:[#allocation5 + $0x98] ss:$12 sps:$4 sm:$0xff]   ;;  %v434_v22 = vld [vmem:[#allocation5 + $0x90] ss:$12 sps:$4 sm:$0xff]  }
  0x2f   :  { %381 = vmatprep.subr.bf16.mxu1 %v518_v0  ;;  %213 = vmatprep.subr.bf16.mxu0 %v415_v8  ;;  %v435_v23 = vld [vmem:[#allocation5 + $0xac] ss:$12 sps:$4 sm:$0xff]   ;;  %v437_v24 = vld [vmem:[#allocation5 + $0xb0] ss:$12 sps:$4 sm:$0xff]   ;;  %v438_v25 = vld [vmem:[#allocation5 + $0xa8] ss:$12 sps:$4 sm:$0xff]  }
  0x30   :  { %s521_s1 = smov [#allocation7]  }
  0x31   :  { %s322_s8 = sshll.u32 %s521_s1, 4  ;;  %s323_s8 = int_to_ptr.vmem [resolvable:$true] %s322_s8 }
  0x32   :  { %382 = vmatpush3.bf16.msra.mxu1 %v417_v9  ;;  %214 = vmatpush1.bf16.msra.mxu0 %v418_v10  ;;  %s484_s9 = scalar_lea.vmem %s323_s8, 384  ;;  %p489_p3 = scmp.lt.s32.totalorder %s323_s8, %s323_s8 }
  0x33   :  { %383 = vmatprep.subr.bf16.mxu1 %v518_v0  ;;  %215 = vmatprep.subr.bf16.mxu0 %v419_v11  ;;  %p485_p2 = scmp.ne.s32.totalorder %s323_s8, %s484_s9  ;;  %p490_p4 = scmp.lt.s32.totalorder %s484_s9, %s484_s9 }
  0x35   :  { %p491_p5 = por %p490_p4, %p489_p3 }
  0x36   :  { %384 = vmatpush3.bf16.msra.mxu1 %v421_v12  ;;  %216 = vmatpush1.bf16.msra.mxu0 %v422_v13 }
  0x37   :  { %385 = vmatprep.subr.bf16.mxu1 %v518_v0  ;;  %217 = vmatprep.subr.bf16.mxu0 %v423_v14  ;;  %p492_p6 = pnand %p491_p5, %p485_p2 }
  0x3a   :  { %386 = vmatpush3.bf16.msra.mxu1 %v425_v15  ;;  %218 = vmatpush1.bf16.msra.mxu0 %v426_v16 }
  0x3b   :  { %387 = vmatprep.subr.bf16.mxu1 %v518_v0  ;;  %219 = vmatprep.subr.bf16.mxu0 %v427_v17 }
  0x3e   :  { %388 = vmatpush3.bf16.msra.mxu1 %v429_v18  ;;  %220 = vmatpush1.bf16.msra.mxu0 %v430_v19 }
  0x3f   :  { %389 = vmatprep.subr.bf16.mxu1 %v518_v0  ;;  %221 = vmatprep.subr.bf16.mxu0 %v431_v20 }
  0x42   :  { %390 = vmatpush3.bf16.msra.mxu1 %v433_v21  ;;  %222 = vmatpush1.bf16.msra.mxu0 %v434_v22 }
  0x43   :  { %391 = vmatprep.subr.bf16.mxu1 %v518_v0  ;;  %223 = vmatprep.subr.bf16.mxu0 %v435_v23 }
  0x46   :  { %392 = vmatpush3.bf16.msra.mxu1 %v437_v24  ;;  %224 = vmatpush1.bf16.msra.mxu0 %v438_v25 }
  0x49   :  { %394 = vmatmul.mubr.bf16.vlgmr.msra.gmra.mrb[0].mxu1 %v439_v26  ;;  %242 = vmatmul.mubr.bf16.vlgmr.msra.gmra.mrb[0].mxu0 %v439_v26 }
 0x11c   :  { %v286_v27 = vpop.f32.mrb[0].mxu1  ;;  %v243_v29 = vpop.f32.mrb[0].mxu0 }
 0x11d   :  { %v365_v28 = vpack.c.bf16 %v286_v27, %v286_v27  ;;  %v395_v30 = vpop.f32.mrb[1].mxu1  ;;  %v245_v31 = vpop.f32.mrb[1].mxu0 }
 0x11e   :  { %v289_v32 = vpop.f32.mrb[2].mxu1  ;;  %v364_v33 = vpack.c.bf16 %v245_v31, %v243_v29  ;;  %v247_v35 = vpop.f32.mrb[2].mxu0 }
 0x11f   :  { %314 = vst [vmem:[#allocation7 + $0x8] sm:$0xf] %v365_v28  ;;  %v367_v34 = vpack.c.bf16 %v289_v32, %v289_v32  ;;  %v396_v36 = vpop.f32.mrb[3].mxu1  ;;  %v249_v37 = vpop.f32.mrb[3].mxu0 }
 0x120   :  { %313 = vst [vmem:[#allocation7] sm:$0xff] %v364_v33  ;;  %v366_v38 = vpack.c.bf16 %v249_v37, %v247_v35 }
 0x121   :  { %316 = vst [vmem:[#allocation7 + $0x14] sm:$0xf] %v367_v34 }
 0x122   :  { %315 = vst [vmem:[#allocation7 + $0xc] sm:$0xff] %v366_v38 }
 0x123   :  { %495 = shalt.err (!%p492_p6)
}
 0x124   :  { %s496_s12 = scalar_lea.hbm %s581_s2, 384 }
 0x125   :  { %p497_p7 = scmp.ne.s32.totalorder %s581_s2, %s496_s12  ;;  %p500_p8 = scmp.lt.u32.totalorder %s496_s12, %s581_s2 }
 0x127   :  { %p502_p9 = pnand %p500_p8, %p497_p7 }
 0x129   :  { %505 = shalt.err (!%p502_p9)
}
 0x12a   :  { %328 = dma.vmem_to_hbm [thread:$0]  %s323_s8, 384, %s581_s2, [#allocation4], %s516_s0, %s516_s0, %s517_s5  }
 0x12b   :  { %510 = dma.done.wait [#allocation4], 384  }
 0x12c   :  { %511 = vsyncadd [#allocation4], 4294966912 }
 0x12d   :  { %332 = vsyncpa [#allocation3], 1 }
 0x12e   :  { %333 = vsyncpa [#allocation6], 1 }
 0x12f   :  { %334 = vsyncpa [#allocation4], 1 }

</bundles_post_ra>
